<compile_context>
chip_gen: v7x
topology: tpu7x:2x2x1
jax: 0.10.0
libtpu: 0.0.40
codegen_flags: <defaults>
</compile_context>

<pallas_src>
import jax
import jax.numpy as jnp
from jax.experimental import pallas as pl
from jax.experimental.pallas import tpu as pltpu

_LANE = 128
_SUBLANE = 8


def _make_kernel(batch, block_b, inv_lambda):
    def kernel(scores_ref, targets_ref, out_ref, m_sc, num_sc, den_sc):
        i = pl.program_id(0)

        @pl.when(i == 0)
        def _init():
            m_sc[...] = jnp.full_like(m_sc, -jnp.inf)
            num_sc[...] = jnp.zeros_like(num_sc)
            den_sc[...] = jnp.zeros_like(den_sc)

        x = scores_ref[...].astype(jnp.float32)   # (block_b, Cp)
        t = targets_ref[...].astype(jnp.float32)  # (block_b, Cp)

        # Numerically stable BCE-with-logits, reduction='none':
        #   max(x, 0) - x*t + log1p(exp(-|x|))
        bce = jnp.maximum(x, 0.0) - x * t + jnp.log1p(jnp.exp(-jnp.abs(x)))

        # Per-sample loss: sum over classes (lane axis).
        loss = jnp.sum(bce, axis=1, keepdims=True)                 # (block_b, 1)

        # Mask rows that are batch padding (grid may overrun the true batch).
        row = i * block_b + jax.lax.broadcasted_iota(jnp.int32, loss.shape, 0)
        valid = row < batch
        loss_m = jnp.where(valid, loss, -jnp.inf)   # for max / softmax weight
        loss_0 = jnp.where(valid, loss, 0.0)        # for the weighted sum

        # Online softmax update of (m, num, den):
        #   sum(Z * loss) == sum(e * loss) / sum(e),  e = exp((loss - m)/lambda)
        m_old = m_sc[...]                                           # (1, 1)
        m_new = jnp.maximum(m_old, jnp.max(loss_m, axis=0, keepdims=True))
        alpha = jnp.exp((m_old - m_new) * inv_lambda)               # rescale old acc
        e = jnp.exp((loss_m - m_new) * inv_lambda)                  # (block_b, 1)

        num_sc[...] = num_sc[...] * alpha + jnp.sum(e * loss_0, axis=0, keepdims=True)
        den_sc[...] = den_sc[...] * alpha + jnp.sum(e, axis=0, keepdims=True)
        m_sc[...] = m_new

        @pl.when(i == pl.num_programs(0) - 1)
        def _finalize():
            res = num_sc[...] / den_sc[...]         # exact divide (no approx vrcp)
            out_ref[0, 0] = res[0, 0]               # scalar store into SMEM

    return kernel


def gfl_logit_bce(scores, targets, gfl_lambda=1.0, block_b=None):
    """Pallas implementation of GFLLogitBinaryCrossEntropy.forward.

    scores, targets: (batch, num_classes); upcast to f32 in-kernel (callers may
    pass bf16 scores / narrow binary targets to halve HBM traffic).
    Returns a float32 scalar.
    """
    assert scores.ndim == 2 and scores.shape == targets.shape
    batch, num_classes = scores.shape

    # Pad classes to a full lane multiple: scores=-1e4 / targets=0 contributes
    # exactly 0 to the per-row BCE sum (exp(-1e4) underflows in f32).
    c_pad = (-num_classes) % _LANE
    if c_pad:
        scores = jnp.pad(scores, ((0, 0), (0, c_pad)), constant_values=-1e4)
        targets = jnp.pad(targets, ((0, 0), (0, c_pad)), constant_values=0)
    cp = num_classes + c_pad

    # Pick a batch block: ~2 MiB per input block so 2 inputs x 2 pipeline
    # buffers (~8 MiB) fit the scoped-VMEM default on v5e / v6e / v7x.
    if block_b is None:
        itemsize = max(jnp.dtype(scores.dtype).itemsize,
                       jnp.dtype(targets.dtype).itemsize)
        block_b = (2 * 1024 * 1024) // (cp * itemsize)
        block_b = max(_SUBLANE, min(block_b, 1024))
    block_b = max(_SUBLANE, (block_b // _SUBLANE) * _SUBLANE)
    block_b = min(block_b, pl.cdiv(batch, _SUBLANE) * _SUBLANE)

    # Pad batch so the grid divides exactly; padded rows are masked in-kernel.
    b_pad = (-batch) % block_b
    if b_pad:
        scores = jnp.pad(scores, ((0, b_pad), (0, 0)))
        targets = jnp.pad(targets, ((0, b_pad), (0, 0)))
    padded_batch = batch + b_pad
    grid = (padded_batch // block_b,)

    in_bytes = (scores.size * scores.dtype.itemsize
                + targets.size * targets.dtype.itemsize)
    cost = pl.CostEstimate(
        flops=6 * padded_batch * cp,
        transcendentals=2 * padded_batch * cp,
        bytes_accessed=in_bytes + 4,
    )

    kernel = _make_kernel(batch=batch, block_b=block_b,
                          inv_lambda=1.0 / float(gfl_lambda))

    out = pl.pallas_call(
        kernel,
        out_shape=jax.ShapeDtypeStruct((1, 1), jnp.float32),
        grid=grid,
        in_specs=[
            pl.BlockSpec((block_b, cp), lambda i: (i, 0)),
            pl.BlockSpec((block_b, cp), lambda i: (i, 0)),
        ],
        out_specs=pl.BlockSpec(memory_space=pltpu.MemorySpace.SMEM),
        scratch_shapes=[
            pltpu.VMEM((1, 1), jnp.float32),  # running max m
            pltpu.VMEM((1, 1), jnp.float32),  # running numerator sum(e*loss)
            pltpu.VMEM((1, 1), jnp.float32),  # running denominator sum(e)
        ],
        compiler_params=pltpu.CompilerParams(
            dimension_semantics=("arbitrary",),
        ),
        cost_estimate=cost,
    )(scores, targets)
    return out[0, 0]


def _reference(scores, targets, gfl_lambda=1.0):
    x = scores.astype(jnp.float32)
    t = targets.astype(jnp.float32)
    bce = jnp.maximum(x, 0.0) - x * t + jnp.log1p(jnp.exp(-jnp.abs(x)))
    loss = jnp.sum(bce, axis=1)
    mx = jnp.max(loss)
    L = (loss - mx) / gfl_lambda
    Z = jnp.exp(L) / jnp.sum(jnp.exp(L))
    return jnp.sum(Z * loss)


if __name__ == "__main__":
    key = jax.random.PRNGKey(0)
    k1, k2, k3, k4 = jax.random.split(key, 4)

    # Test 1: single-block path (B=8, C=128), VQA-style logits.
    B, C = 8, 128
    scores = jax.random.normal(k1, (B, C), dtype=jnp.float32) * 2.0
    targets = (jax.random.uniform(k2, (B, C)) > 0.9).astype(jnp.float32)
    out = jax.block_until_ready(gfl_logit_bce(scores, targets))
    ref = _reference(scores, targets)
    assert jnp.allclose(out, ref, rtol=1e-5, atol=1e-5), (out, ref)

    # Test 2: multi-block online-softmax path with a partial (masked) last block.
    B2, C2 = 37, 128
    scores2 = jax.random.normal(k3, (B2, C2), dtype=jnp.float32) * 2.0
    targets2 = (jax.random.uniform(k4, (B2, C2)) > 0.9).astype(jnp.float32)
    out2 = jax.block_until_ready(gfl_logit_bce(scores2, targets2, block_b=8))
    ref2 = _reference(scores2, targets2)
    assert jnp.allclose(out2, ref2, rtol=1e-5, atol=1e-5), (out2, ref2)

    print("KERNEL_OK")
</pallas_src>

<mosaic_0001>
module attributes {stable_mosaic.version = 11 : i64} {
  func.func @kernel(%arg0: i32, %arg1: memref<8x128xf32, #tpu.memory_space<vmem>>, %arg2: memref<8x128xf32, #tpu.memory_space<vmem>>, %arg3: memref<1x1xf32, #tpu.memory_space<smem>>, %arg4: memref<1x1xf32, #tpu.memory_space<vmem>>, %arg5: memref<1x1xf32, #tpu.memory_space<vmem>>, %arg6: memref<1x1xf32, #tpu.memory_space<vmem>>) attributes {dimension_semantics = [#tpu.dimension_semantics<arbitrary>], iteration_bounds = array<i64: 1>, scalar_prefetch = 0 : i64, scratch_operands = 3 : i64, tpu.core_type = #tpu.core_type<tc>, window_params = [{transform_indices = @transform_0, window_bounds = array<i64: 8, 128>}, {transform_indices = @transform_1, window_bounds = array<i64: 8, 128>}, {transform_indices = @transform_2, window_bounds = array<i64: 1, 1>}]} {
    %c0_i32 = arith.constant 0 : i32
    %0 = arith.cmpi eq, %arg0, %c0_i32 : i32
    %1 = arith.extui %0 : i1 to i32
    %c0_i32_0 = arith.constant 0 : i32
    %2 = arith.cmpi ne, %1, %c0_i32_0 : i32
    scf.if %2 {
      %cst_28 = arith.constant 0xFF800000 : f32
      %57 = vector.broadcast %cst_28 : f32 to vector<1x1xf32>
      %c0_29 = arith.constant 0 : index
      %c0_30 = arith.constant 0 : index
      %58 = vector.load %arg4[%c0_29, %c0_30] : memref<1x1xf32, #tpu.memory_space<vmem>>, vector<1x1xf32>
      tpu.vector_store %arg4[%c0_29, %c0_30], %57 {strides = array<i32>} : memref<1x1xf32, #tpu.memory_space<vmem>>, vector<1x1xf32>,
      %cst_31 = arith.constant 0.000000e+00 : f32
      %59 = vector.broadcast %cst_31 : f32 to vector<1x1xf32>
      %c0_32 = arith.constant 0 : index
      %c0_33 = arith.constant 0 : index
      %60 = vector.load %arg5[%c0_32, %c0_33] : memref<1x1xf32, #tpu.memory_space<vmem>>, vector<1x1xf32>
      tpu.vector_store %arg5[%c0_32, %c0_33], %59 {strides = array<i32>} : memref<1x1xf32, #tpu.memory_space<vmem>>, vector<1x1xf32>,
      %cst_34 = arith.constant 0.000000e+00 : f32
      %61 = vector.broadcast %cst_34 : f32 to vector<1x1xf32>
      %c0_35 = arith.constant 0 : index
      %c0_36 = arith.constant 0 : index
      %62 = vector.load %arg6[%c0_35, %c0_36] : memref<1x1xf32, #tpu.memory_space<vmem>>, vector<1x1xf32>
      tpu.vector_store %arg6[%c0_35, %c0_36], %61 {strides = array<i32>} : memref<1x1xf32, #tpu.memory_space<vmem>>, vector<1x1xf32>,
    } else {
    }
    %c0 = arith.constant 0 : index
    %c0_1 = arith.constant 0 : index
    %3 = vector.load %arg1[%c0, %c0_1] : memref<8x128xf32, #tpu.memory_space<vmem>>, vector<8x128xf32>
    %c0_2 = arith.constant 0 : index
    %c0_3 = arith.constant 0 : index
    %4 = vector.load %arg2[%c0_2, %c0_3] : memref<8x128xf32, #tpu.memory_space<vmem>>, vector<8x128xf32>
    %cst = arith.constant 0.000000e+00 : f32
    %5 = vector.broadcast %cst : f32 to vector<8x128xf32>
    %6 = arith.maximumf %3, %5 : vector<8x128xf32>
    %7 = arith.mulf %3, %4 : vector<8x128xf32>
    %8 = arith.subf %6, %7 : vector<8x128xf32>
    %9 = math.absf %3 : vector<8x128xf32>
    %cst_4 = arith.constant 0.000000e+00 : f32
    %10 = vector.broadcast %cst_4 : f32 to vector<8x128xf32>
    %11 = arith.subf %10, %9 : vector<8x128xf32>
    %12 = math.exp %11 : vector<8x128xf32>
    %13 = math.log1p %12 : vector<8x128xf32>
    %14 = arith.addf %8, %13 : vector<8x128xf32>
    %cst_5 = arith.constant dense<0.000000e+00> : vector<8xf32>
    %15 = vector.multi_reduction <add>, %14, %cst_5 [1] : vector<8x128xf32> to vector<8xf32>
    %16 = vector.shape_cast %15 : vector<8xf32> to vector<8x1xf32>
    %c8_i32 = arith.constant 8 : i32
    %17 = arith.muli %arg0, %c8_i32 : i32
    %18 = tpu.iota {dimensions = array<i32: 0>} : vector<8x1xi32>
    %19 = vector.broadcast %17 : i32 to vector<8x1xi32>
    %20 = arith.addi %19, %18 : vector<8x1xi32>
    %c8_i32_6 = arith.constant 8 : i32
    %21 = vector.broadcast %c8_i32_6 : i32 to vector<8x1xi32>
    %22 = arith.cmpi slt, %20, %21 : vector<8x1xi32>
    %cst_7 = arith.constant 0xFF800000 : f32
    %23 = vector.broadcast %cst_7 : f32 to vector<8x1xf32>
    %24 = arith.select %22, %16, %23 : vector<8x1xi1>, vector<8x1xf32>
    %cst_8 = arith.constant 0.000000e+00 : f32
    %25 = vector.broadcast %cst_8 : f32 to vector<8x1xf32>
    %26 = arith.select %22, %16, %25 : vector<8x1xi1>, vector<8x1xf32>
    %c0_9 = arith.constant 0 : index
    %c0_10 = arith.constant 0 : index
    %27 = vector.load %arg4[%c0_9, %c0_10] : memref<1x1xf32, #tpu.memory_space<vmem>>, vector<1x1xf32>
    %cst_11 = arith.constant dense<0xFF800000> : vector<1xf32>
    %28 = vector.multi_reduction <maximumf>, %24, %cst_11 [0] : vector<8x1xf32> to vector<1xf32>
    %29 = vector.shape_cast %28 : vector<1xf32> to vector<1x1xf32>
    %30 = arith.maximumf %27, %29 : vector<1x1xf32>
    %31 = arith.subf %27, %30 : vector<1x1xf32>
    %cst_12 = arith.constant 1.000000e+00 : f32
    %32 = vector.broadcast %cst_12 : f32 to vector<1x1xf32>
    %33 = arith.mulf %31, %32 : vector<1x1xf32>
    %34 = math.exp %33 : vector<1x1xf32>
    %35 = vector.broadcast %30 : vector<1x1xf32> to vector<8x1xf32>
    %36 = arith.subf %24, %35 : vector<8x1xf32>
    %cst_13 = arith.constant 1.000000e+00 : f32
    %37 = vector.broadcast %cst_13 : f32 to vector<8x1xf32>
    %38 = arith.mulf %36, %37 : vector<8x1xf32>
    %39 = math.exp %38 : vector<8x1xf32>
    %c0_14 = arith.constant 0 : index
    %c0_15 = arith.constant 0 : index
    %40 = vector.load %arg5[%c0_14, %c0_15] : memref<1x1xf32, #tpu.memory_space<vmem>>, vector<1x1xf32>
    %41 = arith.mulf %40, %34 : vector<1x1xf32>
    %42 = arith.mulf %39, %26 : vector<8x1xf32>
    %cst_16 = arith.constant dense<0.000000e+00> : vector<1xf32>
    %43 = vector.multi_reduction <add>, %42, %cst_16 [0] : vector<8x1xf32> to vector<1xf32>
    %44 = vector.shape_cast %43 : vector<1xf32> to vector<1x1xf32>
    %45 = arith.addf %41, %44 : vector<1x1xf32>
    %c0_17 = arith.constant 0 : index
    %c0_18 = arith.constant 0 : index
    %46 = vector.load %arg5[%c0_17, %c0_18] : memref<1x1xf32, #tpu.memory_space<vmem>>, vector<1x1xf32>
    tpu.vector_store %arg5[%c0_17, %c0_18], %45 {strides = array<i32>} : memref<1x1xf32, #tpu.memory_space<vmem>>, vector<1x1xf32>,
    %c0_19 = arith.constant 0 : index
    %c0_20 = arith.constant 0 : index
    %47 = vector.load %arg6[%c0_19, %c0_20] : memref<1x1xf32, #tpu.memory_space<vmem>>, vector<1x1xf32>
    %48 = arith.mulf %47, %34 : vector<1x1xf32>
    %cst_21 = arith.constant dense<0.000000e+00> : vector<1xf32>
    %49 = vector.multi_reduction <add>, %39, %cst_21 [0] : vector<8x1xf32> to vector<1xf32>
    %50 = vector.shape_cast %49 : vector<1xf32> to vector<1x1xf32>
    %51 = arith.addf %48, %50 : vector<1x1xf32>
    %c0_22 = arith.constant 0 : index
    %c0_23 = arith.constant 0 : index
    %52 = vector.load %arg6[%c0_22, %c0_23] : memref<1x1xf32, #tpu.memory_space<vmem>>, vector<1x1xf32>
    tpu.vector_store %arg6[%c0_22, %c0_23], %51 {strides = array<i32>} : memref<1x1xf32, #tpu.memory_space<vmem>>, vector<1x1xf32>,
    %c0_24 = arith.constant 0 : index
    %c0_25 = arith.constant 0 : index
    %53 = vector.load %arg4[%c0_24, %c0_25] : memref<1x1xf32, #tpu.memory_space<vmem>>, vector<1x1xf32>
    tpu.vector_store %arg4[%c0_24, %c0_25], %30 {strides = array<i32>} : memref<1x1xf32, #tpu.memory_space<vmem>>, vector<1x1xf32>,
    %c0_i32_26 = arith.constant 0 : i32
    %54 = arith.cmpi eq, %arg0, %c0_i32_26 : i32
    %55 = arith.extui %54 : i1 to i32
    %c0_i32_27 = arith.constant 0 : i32
    %56 = arith.cmpi ne, %55, %c0_i32_27 : i32
    scf.if %56 {
      %c0_28 = arith.constant 0 : index
      %c0_29 = arith.constant 0 : index
      %57 = vector.load %arg5[%c0_28, %c0_29] : memref<1x1xf32, #tpu.memory_space<vmem>>, vector<1x1xf32>
      %c0_30 = arith.constant 0 : index
      %c0_31 = arith.constant 0 : index
      %58 = vector.load %arg6[%c0_30, %c0_31] : memref<1x1xf32, #tpu.memory_space<vmem>>, vector<1x1xf32>
      %59 = arith.divf %57, %58 : vector<1x1xf32>
      %60 = vector.extract %59[0, 0] : f32 from vector<1x1xf32>
      %c0_32 = arith.constant 0 : index
      %c0_33 = arith.constant 0 : index
      %61 = memref.load %arg3[%c0_32, %c0_33] : memref<1x1xf32, #tpu.memory_space<smem>>
      memref.store %60, %arg3[%c0_32, %c0_33] : memref<1x1xf32, #tpu.memory_space<smem>>
    } else {
    }
    return
  }
  func.func @transform_0(%arg0: i32) -> (i32, i32) {
    %c0_i32 = arith.constant 0 : i32
    %c0_i32_0 = arith.constant 0 : i32
    return %arg0, %c0_i32 : i32, i32
  }
  func.func @transform_1(%arg0: i32) -> (i32, i32) {
    %c0_i32 = arith.constant 0 : i32
    %c0_i32_0 = arith.constant 0 : i32
    return %arg0, %c0_i32 : i32, i32
  }
  func.func @transform_2(%arg0: i32) -> (i32, i32) {
    %c0_i32 = arith.constant 0 : i32
    %c0_i32_0 = arith.constant 0 : i32
    %c0_i32_1 = arith.constant 0 : i32
    return %c0_i32, %c0_i32_0 : i32, i32
  }
}

</mosaic_0001>

<bundles_post_ra>
// kernel: tpu_custom_call.1
= control target key start
LH: loop header
LB: loop body
LE: loop exit
PB: predicated region body
PF: predicated region fallthrough
CT: control target
= control target key end

     0   :  { %7 = vsyncpa [#allocation6], 0  ;;  %s283_s0 = inlined_call_operand.hbm [shape: f32[8,128], index: 0, kind: input, shape index: {}]   ;;  %s284_s1 = inlined_call_operand.hbm [shape: f32[8,128], index: 1, kind: input, shape index: {}]   ;;  %s285_s2 = inlined_call_operand.hbm [shape: f32[1,1], index: 2, kind: output, shape index: {}]  }
   0x1   :  { %8 = vsyncpa [#allocation9], 0 }
   0x2   :  { %9 = vsyncpa [#allocation7], 0  ;;  %s221_s9 = smov [#allocation5]   ;;  %s222_s11 = smov [#allocation8]  }
   0x3   :  { %s16_s10 = sshll.u32 %s221_s9, 4  ;;  %s26_s12 = sshll.u32 %s222_s11, 4  ;;  %s17_s10 = int_to_ptr.vmem [resolvable:$true] %s16_s10  ;;  %s27_s12 = int_to_ptr.vmem [resolvable:$true] %s26_s12 }
   0x4   :  { %s161_s15 = scalar_lea.hbm %s283_s0, 128 }
   0x5   :  { %p162_p0 = scmp.ne.s32.totalorder %s283_s0, %s161_s15  ;;  %p165_p1 = scmp.lt.u32.totalorder %s161_s15, %s283_s0 }
   0x7   :  { %p167_p2 = pnand %p165_p1, %p162_p0 }
   0x9   :  { %170 = shalt.err (!%p167_p2)
}
   0xa   :  { %s171_s20 = scalar_lea.vmem %s17_s10, 128  ;;  %p176_p4 = scmp.lt.s32.totalorder %s17_s10, %s17_s10 }
   0xb   :  { %p172_p3 = scmp.ne.s32.totalorder %s17_s10, %s171_s20  ;;  %p177_p5 = scmp.lt.s32.totalorder %s171_s20, %s171_s20 }
   0xd   :  { %p178_p6 = por %p177_p5, %p176_p4 }
   0xf   :  { %p179_p7 = pnand %p178_p6, %p172_p3 }
  0x11   :  { %182 = shalt.err (!%p179_p7)
}
  0x12   :  { %19 = dma.hbm_to_vmem [thread:$0]  %s283_s0, 128, %s17_s10, [#allocation6]  }
  0x13   :  { %s183_s25 = scalar_lea.hbm %s284_s1, 128 }
  0x14   :  { %p184_p8 = scmp.ne.s32.totalorder %s284_s1, %s183_s25  ;;  %p187_p9 = scmp.lt.u32.totalorder %s183_s25, %s284_s1 }
  0x16   :  { %p189_p10 = pnand %p187_p9, %p184_p8 }
  0x18   :  { %192 = shalt.err (!%p189_p10)
}
  0x19   :  { %s193_s30 = scalar_lea.vmem %s27_s12, 128  ;;  %p198_p12 = scmp.lt.s32.totalorder %s27_s12, %s27_s12 }
  0x1a   :  { %p194_p11 = scmp.ne.s32.totalorder %s27_s12, %s193_s30  ;;  %p199_p13 = scmp.lt.s32.totalorder %s193_s30, %s193_s30 }
  0x1c   :  { %p200_p0 = por %p199_p13, %p198_p12 }
  0x1e   :  { %p201_p1 = pnand %p200_p0, %p194_p11 }
  0x20   :  { %204 = shalt.err (!%p201_p1)
}
  0x21   :  { %29 = dma.hbm_to_vmem [thread:$0]  %s284_s1, 128, %s27_s12, [#allocation9]  }
  0x22   :  { %215 = dma.done.wait [#allocation6], 128  }
  0x23   :  { %216 = vsyncadd [#allocation6], 4294967168 }
  0x24   :  { %217 = dma.done.wait [#allocation9], 128  }
  0x25   :  { %218 = vsyncadd [#allocation9], 4294967168  ;;  %vm40_vm0 = vcmask 0   ;;  %v223_v0 = vmov -inf   ;;  %v224_v1 = vmov 0.0   ;;  %v44_v2 = vld [vmem:[#allocation5] sm:$0xff]  ;;  %v85_v23 = vlaneseq }
  0x26   :  { %41 = vst.msk [vmem:[#allocation2] sm:$0x1] %vm40_vm0, %v223_v0  ;;  %42 = vst.msk [vmem:[#allocation3] sm:$0x1] %vm40_vm0, %v224_v1  ;;  %v49_v3 = vand.u32 2147483647, %v44_v2 }
  0x27   :  { %43 = vst.msk [vmem:[#allocation4] sm:$0x1] %vm40_vm0, %v224_v1  ;;  %v45_v9 = vld [vmem:[#allocation8] sm:$0xff]  ;;  %v46_v11 = vmax.f32 %v44_v2, 0.0  ;;  %v86_v26 = vshrl.u32 %v85_v23, 7  ;;  %vm96_vm2 = vcmask 7168  }
  0x28   :  { %v50_v4 = vsub.f32 0.0, %v49_v3  ;;  %v47_v12 = vmul.f32 %v45_v9, %v44_v2  ;;  %s205_s6 = scalar_lea.hbm %s285_s2, 16 }
  0x29   :  { %v87_v30 = vsub.s32 0, %v86_v26  ;;  %p206_p2 = scmp.ne.s32.totalorder %s285_s2, %s205_s6  ;;  %p209_p3 = scmp.lt.u32.totalorder %s205_s6, %s285_s2 }
  0x2a   :  { %v51_v5 = vmul.f32 1.442695, %v50_v4  ;;  %v48_v16 = vsub.f32 %v46_v11, %v47_v12 }
  0x2b   :  { %p211_p4 = pnand %p209_p3, %p206_p2 }
  0x2c   :  { %151 = vpow2.f32 %v51_v5 }
  0x2d   :  { %v73_v28 = vld [vmem:[#allocation2] sm:$0x1]  ;;  %v93_v52 = vld [vmem:[#allocation3] sm:$0x1] }
  0x2e   :  { %v107_v49 = vld [vmem:[#allocation4] sm:$0x1] }
  0x36   :  { %v152_v6 = vpop.eup %151 }
  0x37   :  { %v53_v7 = vadd.f32 1.0, %v152_v6  ;;  %v56_v8 = vmul.f32 -0.5, %v152_v6  ;;  %v59_v13 = vand.u32 2147483647, %v152_v6 }
  0x39   :  { %153 = vlog2.f32 %v53_v7  ;;  %v57_v10 = vadd.f32 1.0, %v56_v8  ;;  %vm60_vm1 = vcmp.lt.f32.partialorder %v59_v13, 0.0004427343 }
  0x3b   :  { %v58_v14 = vmul.f32 %v152_v6, %v57_v10 }
  0x43   :  { %v154_v15 = vpop.eup %153 }
  0x44   :  { %v55_v17 = vmul.f32 0.6931472, %v154_v15 }
  0x46   :  { %v61_v18 = vsel %vm60_vm1, %v58_v14, %v55_v17 }
  0x47   :  { %v62_v19 = vadd.f32 %v61_v18, %v48_v16 }
  0x49   :  { %63 = vadd.xlane.f32.xlu0 %v62_v19 }
  0xd6   :  { %v64_v20 = vpop.xlane.xlu0 %63 }
  0xd7   :  { %v74_v21 = vrot.slane %v64_v20, 4 }
  0xd9   :  { %v75_v22 = vmax.f32 %v64_v20, %v74_v21 }
  0xdb   :  { %v76_v24 = vrot.slane %v75_v22, 2 }
  0xdd   :  { %v77_v25 = vmax.f32 %v75_v22, %v76_v24 }
  0xdf   :  { %v78_v27 = vrot.slane %v77_v25, 1 }
  0xe1   :  { %v79_v29 = vmax.f32 %v77_v25, %v78_v27 }
  0xe3   :  { %v80_v31 = vmax.f32 %v73_v28, %v79_v29 }
  0xe5   :  { %v88_v32 = vrot.slane %v80_v31, %v87_v30  ;;  %118 = vst.msk [vmem:[#allocation2] sm:$0x1] %vm40_vm0, %v80_v31  ;;  %v81_v35 = vsub.f32 %v73_v28, %v80_v31 }
  0xe7   :  { %v90_v33 = vsub.f32 %v64_v20, %v88_v32  ;;  %v82_v36 = vmul.f32 1.442695, %v81_v35 }
  0xe9   :  { %v91_v34 = vmul.f32 1.442695, %v90_v33 }
  0xeb   :  { %155 = vpow2.f32 %v91_v34 }
  0xec   :  { %157 = vpow2.f32 %v82_v36 }
  0xf5   :  { %v156_v37 = vpop.eup %155 }
  0xf6   :  { %v95_v38 = vmul.f32 %v156_v37, %v64_v20  ;;  %v109_v39 = vsel %vm96_vm2, %v156_v37, 0.0  ;;  %v158_v48 = vpop.eup %157 }
  0xf7   :  { %v110_v40 = vrot.slane %v109_v39, 4  ;;  %v108_v54 = vmul.f32 %v158_v48, %v107_v49  ;;  %v94_v56 = vmul.f32 %v158_v48, %v93_v52 }
  0xf8   :  { %v97_v41 = vsel %vm96_vm2, %v95_v38, 0.0 }
  0xf9   :  { %v98_v42 = vrot.slane %v97_v41, 4  ;;  %v111_v43 = vadd.f32 %v110_v40, %v109_v39 }
  0xfb   :  { %v99_v44 = vadd.f32 %v98_v42, %v97_v41  ;;  %v112_v45 = vrot.slane %v111_v43, 2 }
  0xfd   :  { %v100_v46 = vrot.slane %v99_v44, 2  ;;  %v113_v47 = vadd.f32 %v112_v45, %v111_v43 }
  0xff   :  { %v101_v50 = vadd.f32 %v100_v46, %v99_v44  ;;  %v114_v51 = vrot.slane %v113_v47, 1 }
 0x101   :  { %v102_v53 = vrot.slane %v101_v50, 1  ;;  %v115_v55 = vadd.f32 %v114_v51, %v113_v47 }
 0x103   :  { %v103_v57 = vadd.f32 %v102_v53, %v101_v50  ;;  %v116_v58 = vadd.f32 %v115_v55, %v108_v54 }
 0x105   :  { %v104_v59 = vadd.f32 %v103_v57, %v94_v56  ;;  %117 = vst.msk [vmem:[#allocation4] sm:$0x1] %vm40_vm0, %v116_v58 }
 0x107   :  { %106 = vst.msk [vmem:[#allocation3] sm:$0x1] %vm40_vm0, %v104_v59 }
 0x10c   :  { %v123_v60 = vld [vmem:[#allocation4] sm:$0x1] }
 0x10d   :  { %159 = vrcp.f32 %v123_v60 }
 0x10e   :  { %v122_v62 = vld [vmem:[#allocation3] sm:$0x1] }
 0x117   :  { %v160_v61 = vpop.eup %159 }
 0x118   :  { %v125_v63 = vmul.f32 %v160_v61, %v122_v62 }
 0x11a   :  { %144 = vpush %v125_v63 }
 0x14b   :  { %s145_s1 = spop %144 }
 0x14c   :  { %128 = sst [smem:[#allocation10]] %s145_s1 }
 0x14d   :  { %214 = shalt.err (!%p211_p4)
}
 0x14e   :  { %s225_s11 = smov [#allocation10]  }
 0x14f   :  { %136 = dma.smem_to_hbm %s225_s11, 16, %s285_s2, [#allocation7]  }
 0x150   :  { %219 = dma.done.wait [#allocation7], 16  }
 0x151   :  { %220 = vsyncadd [#allocation7], 4294967280 }
 0x152   :  { %140 = sfence }
 0x153   :  { %141 = vsyncpa [#allocation6], 1 }
 0x154   :  { %142 = vsyncpa [#allocation9], 1 }
 0x155   :  { %143 = vsyncpa [#allocation7], 1 }

</bundles_post_ra>
